<compile_context>
chip_gen: v6e
topology: v6e:2x2x1
jax: 0.10.0
libtpu: 0.0.40
codegen_flags: <defaults>
</compile_context>

<pallas_src>
import functools

import numpy as np
import jax
import jax.numpy as jnp
from jax.experimental import pallas as pl
from jax.experimental.pallas import tpu as pltpu


_VMEM_LIMIT_BYTES = 32 * 1024 * 1024   # explicit; fits v5e/v6e (128 MiB) & v7x (64 MiB)
_VMEM_BLOCK_BUDGET = 24 * 1024 * 1024  # 3 resident blocks x 2 pipeline buffers
_TARGET_BLOCK_BYTES = 2 * 1024 * 1024  # >= ~2 MiB blocks for good HBM pipelining


def _tile_rows(n, d, itemsize):
    """Rows per block: large enough to pipeline well, small enough for v7x VMEM."""
    row_bytes = max(1, d * itemsize)
    rows = _TARGET_BLOCK_BYTES // row_bytes
    rows = min(rows, _VMEM_BLOCK_BUDGET // (6 * row_bytes))
    rows = max(16, (rows // 16) * 16)   # multiple of 16 (f32 and bf16 tiling safe)
    return n if rows >= n else int(rows)


# ---------------------------------------------------------------------------
# Pallas kernels
# ---------------------------------------------------------------------------
def _col_mean_kernel(x_ref, o_ref, acc_ref, *, n_rows, tile_rows):
    """Tiled column mean over nodes; f32 accumulator, init/finalize via pl.when."""
    i = pl.program_id(0)

    @pl.when(i == 0)
    def _init():
        acc_ref[...] = jnp.zeros_like(acc_ref)

    x = x_ref[...].astype(jnp.float32)
    if n_rows % tile_rows != 0:
        # Mask the padded rows of the (partial) last block out of the sum.
        row = i * tile_rows + jax.lax.broadcasted_iota(jnp.int32, x.shape, 0)
        x = jnp.where(row < n_rows, x, 0.0)
    acc_ref[...] += jnp.sum(x, axis=0, keepdims=True)

    @pl.when(i == pl.num_programs(0) - 1)
    def _finalize():
        o_ref[...] = (acc_ref[...] * (1.0 / n_rows)).astype(o_ref.dtype)


def _masked_row_write_kernel(x_ref, m_ref, v_ref, o_ref):
    """out = where(row selected, replacement_row, x).  Pure memory-bound select."""
    o_ref[...] = jnp.where(m_ref[...] > 0, v_ref[...], x_ref[...])


def col_mean_pallas(x, *, tile_n=None):
    n, d = x.shape
    tn = tile_n if tile_n is not None else _tile_rows(n, d, x.dtype.itemsize)
    grid = (pl.cdiv(n, tn),)
    return pl.pallas_call(
        functools.partial(_col_mean_kernel, n_rows=n, tile_rows=tn),
        out_shape=jax.ShapeDtypeStruct((1, d), x.dtype),
        grid_spec=pltpu.PrefetchScalarGridSpec(
            num_scalar_prefetch=0,
            grid=grid,
            in_specs=[pl.BlockSpec((tn, d), lambda i: (i, 0))],
            out_specs=pl.BlockSpec((1, d), lambda i: (0, 0)),
            scratch_shapes=[pltpu.VMEM((1, d), jnp.float32)],
        ),
        compiler_params=pltpu.CompilerParams(
            dimension_semantics=("arbitrary",),     # reduction axis (resident acc)
            vmem_limit_bytes=_VMEM_LIMIT_BYTES),
    )(x)


def masked_row_write_pallas(x, mask_rows, row_val, *, tile_n=None):
    n, d = x.shape
    tn = tile_n if tile_n is not None else _tile_rows(n, d, x.dtype.itemsize)
    grid = (pl.cdiv(n, tn),)
    mask2d = mask_rows.astype(x.dtype).reshape(n, 1)    # dtype-matched select
    row_val = row_val.astype(x.dtype).reshape(1, d)
    return pl.pallas_call(
        _masked_row_write_kernel,
        out_shape=jax.ShapeDtypeStruct((n, d), x.dtype),
        grid_spec=pltpu.PrefetchScalarGridSpec(
            num_scalar_prefetch=0,
            grid=grid,
            in_specs=[pl.BlockSpec((tn, d), lambda i: (i, 0)),
                      pl.BlockSpec((tn, 1), lambda i: (i, 0)),
                      pl.BlockSpec((1, d), lambda i: (0, 0))],
            out_specs=pl.BlockSpec((tn, d), lambda i: (i, 0)),
        ),
        compiler_params=pltpu.CompilerParams(
            dimension_semantics=("parallel",),      # row tiles independent -> 2 TCs on v7x
            vmem_limit_bytes=_VMEM_LIMIT_BYTES),
        input_output_aliases={0: 0},                # update x's buffer in place
    )(x, mask2d, row_val)


# ---------------------------------------------------------------------------
# Augmentation glue (randomness / index bookkeeping in plain JAX, one jit each)
# ---------------------------------------------------------------------------
def _filter_edges(edge_index, keep_mask):
    # PyG `subgraph(keep_idx, edge_index)` drops edges touching removed nodes.
    # JAX needs static shapes, so dropped edge columns are padded with -1.
    src, dst = edge_index[0], edge_index[1]
    edge_keep = keep_mask[src] & keep_mask[dst]
    return jnp.where(edge_keep[None, :], edge_index, -1)


@functools.partial(jax.jit, static_argnames=("aug_ratio",))
def attr_mask(x, edge_index, aug_ratio, key):
    n, d = x.shape
    mask_num = int(n * aug_ratio)
    token = col_mean_pallas(x)                       # (1, D) column mean
    if mask_num == 0:
        return x, edge_index
    # uniform multinomial with replacement == uniform randint
    mask_idx = jax.random.randint(key, (mask_num,), 0, n)
    mask_rows = jnp.zeros((n,), x.dtype).at[mask_idx].set(1)
    return masked_row_write_pallas(x, mask_rows, token), edge_index


@functools.partial(jax.jit, static_argnames=("aug_ratio",))
def edge_perturb(x, edge_index, aug_ratio, key):
    n = x.shape[0]
    e = edge_index.shape[1]
    permute_num = int(e * aug_ratio)
    k1, k2 = jax.random.split(key)
    add_edge_idx = jax.random.randint(k1, (2, permute_num), 0, n,
                                      dtype=edge_index.dtype)
    # reference samples kept edges WITH replacement (multinomial(replacement=True))
    keep_edge_idx = jax.random.randint(k2, (e - permute_num,), 0, e)
    new_edge_index = jnp.concatenate(
        [edge_index[:, keep_edge_idx], add_edge_idx], axis=1)
    return x, new_edge_index


@functools.partial(jax.jit, static_argnames=("aug_ratio",))
def node_drop(x, edge_index, aug_ratio, key):
    n, d = x.shape
    drop_num = int(n * aug_ratio)
    keep_num = n - drop_num
    keep_idx = jax.random.permutation(key, n)[:keep_num]
    keep_mask = jnp.zeros((n,), bool).at[keep_idx].set(True)
    drop_rows = jnp.logical_not(keep_mask)
    x_out = masked_row_write_pallas(x, drop_rows, jnp.zeros((1, d), x.dtype))
    return x_out, _filter_edges(edge_index, keep_mask)


@functools.partial(jax.jit, static_argnames=("aug_ratio",))
def subgraph_aug(x, edge_index, aug_ratio, key):
    n, d = x.shape
    sub_num = max(int(n * aug_ratio), 1)
    start = jax.random.randint(key, (), 0, n)
    member0 = jnp.zeros((n,), bool).at[start].set(True)
    src, dst = edge_index[0], edge_index[1]

    def expand(member):
        m_i = member.astype(jnp.int32)
        fwd = jnp.zeros((n,), jnp.int32).at[dst].add(m_i[src])
        bwd = jnp.zeros((n,), jnp.int32).at[src].add(m_i[dst])
        return member | (fwd > 0) | (bwd > 0)

    def cond(carry):
        member, k, grew = carry
        return (k < sub_num) & grew & (jnp.sum(member) < sub_num)

    def body(carry):
        member, k, _ = carry
        new = expand(member)
        grew = jnp.sum(new) > jnp.sum(member)
        return new, k + 1, grew

    member, _, _ = jax.lax.while_loop(
        cond, body, (member0, jnp.int32(1), jnp.array(True)))
    # TODO(synk): the reference's exact trim-to-sub_num via unique/counts on
    # dynamically sized index tensors has no static-shape JAX equivalent; the
    # early-exiting BFS membership is used as the kept node set instead.
    keep_mask = member
    drop_rows = jnp.logical_not(keep_mask)
    x_out = masked_row_write_pallas(x, drop_rows, jnp.zeros((1, d), x.dtype))
    return x_out, _filter_edges(edge_index, keep_mask)


class Augmentor:
    """JAX/Pallas port of the PyTorch Augmentor module."""

    def __init__(self, aug_ratio, preset=-1):
        self.aug_ratio = aug_ratio
        self.aug = preset   # like the reference, overwritten on every forward

    def __call__(self, x, edge_index, key):
        # Branch selection on the host (numpy RNG), matching the reference's
        # np.random.randint(4); no device->host sync of a traced value.
        self.aug = int(np.random.randint(4))
        if self.aug == 0:
            return node_drop(x, edge_index, self.aug_ratio, key)
        elif self.aug == 1:
            return subgraph_aug(x, edge_index, self.aug_ratio, key)
        elif self.aug == 2:
            return edge_perturb(x, edge_index, self.aug_ratio, key)
        elif self.aug == 3:
            return attr_mask(x, edge_index, self.aug_ratio, key)
        else:
            raise AssertionError("sample augmentation error")


# ---------------------------------------------------------------------------
if __name__ == "__main__":
    np.random.seed(0)
    key = jax.random.PRNGKey(0)
    kx, ke, kfwd = jax.random.split(key, 3)

    N, D, E = 512, 128, 1024              # small graph: 512 nodes, 128-dim feats
    x = jax.random.normal(kx, (N, D), dtype=jnp.float32)
    edge_index = jax.random.randint(ke, (2, E), 0, N, dtype=jnp.int32)

    aug = Augmentor(aug_ratio=0.2)

    # Forward pass with the module's random augmentation choice.
    x_out, ei_out = aug(x, edge_index, kfwd)
    jax.block_until_ready(x_out)
    jax.block_until_ready(ei_out)

    # Exercise every branch once so both Pallas kernels are executed.
    for fn in (node_drop, subgraph_aug, edge_perturb, attr_mask):
        xo, eo = fn(x, edge_index, 0.2, kfwd)
        jax.block_until_ready(xo)
        jax.block_until_ready(eo)

    # Numerical checks of the Pallas kernels (multi-tile grid: tile_n=128 -> 4 tiles).
    token = col_mean_pallas(x, tile_n=128)
    ref_token = jnp.mean(x, axis=0, keepdims=True)
    assert jnp.allclose(token, ref_token, atol=1e-5, rtol=1e-5)

    mask_rows = (jax.random.uniform(kfwd, (N,)) < 0.2).astype(x.dtype)
    out = masked_row_write_pallas(x, mask_rows, token, tile_n=128)
    ref = jnp.where(mask_rows[:, None] > 0, ref_token, x)
    assert jnp.allclose(out, ref, atol=1e-5, rtol=1e-5)

    assert x_out.shape == (N, D) and x_out.dtype == jnp.float32
    print("KERNEL_OK")
</pallas_src>

<mosaic_0001>
module attributes {stable_mosaic.version = 11 : i64} {
  func.func @_masked_row_write_kernel(%arg0: i32, %arg1: memref<512x128xf32, #tpu.memory_space<vmem>>, %arg2: memref<512x1xf32, #tpu.memory_space<vmem>>, %arg3: memref<1x128xf32, #tpu.memory_space<vmem>>, %arg4: memref<512x128xf32, #tpu.memory_space<vmem>>) attributes {dimension_semantics = [#tpu.dimension_semantics<parallel>], iteration_bounds = array<i64: 1>, scalar_prefetch = 0 : i64, scratch_operands = 0 : i64, tpu.core_type = #tpu.core_type<tc>, window_params = [{transform_indices = @transform_0, window_bounds = array<i64: 512, 128>}, {transform_indices = @transform_1, window_bounds = array<i64: 512, 1>}, {pipeline_mode = #tpu.pipeline_mode<synchronous>, transform_indices = @transform_2, window_bounds = array<i64: 1, 128>}, {transform_indices = @transform_3, window_bounds = array<i64: 512, 128>}]} {
    %c0 = arith.constant 0 : index
    %c0_0 = arith.constant 0 : index
    %0 = vector.load %arg2[%c0, %c0_0] : memref<512x1xf32, #tpu.memory_space<vmem>>, vector<512x1xf32>
    %cst = arith.constant 0.000000e+00 : f32
    %1 = vector.broadcast %cst : f32 to vector<512x1xf32>
    %2 = arith.cmpf ogt, %0, %1 : vector<512x1xf32>
    %c0_1 = arith.constant 0 : index
    %c0_2 = arith.constant 0 : index
    %3 = vector.load %arg3[%c0_1, %c0_2] : memref<1x128xf32, #tpu.memory_space<vmem>>, vector<1x128xf32>
    %c0_3 = arith.constant 0 : index
    %c0_4 = arith.constant 0 : index
    %4 = vector.load %arg1[%c0_3, %c0_4] : memref<512x128xf32, #tpu.memory_space<vmem>>, vector<512x128xf32>
    %5 = vector.shape_cast %2 : vector<512x1xi1> to vector<512x1xi1>
    %6 = vector.broadcast %5 : vector<512x1xi1> to vector<512x128xi1>
    %7 = vector.shape_cast %3 : vector<1x128xf32> to vector<1x128xf32>
    %8 = vector.broadcast %7 : vector<1x128xf32> to vector<512x128xf32>
    %9 = arith.select %6, %8, %4 : vector<512x128xi1>, vector<512x128xf32>
    %c0_5 = arith.constant 0 : index
    %c0_6 = arith.constant 0 : index
    %10 = vector.load %arg4[%c0_5, %c0_6] : memref<512x128xf32, #tpu.memory_space<vmem>>, vector<512x128xf32>
    tpu.vector_store %arg4[%c0_5, %c0_6], %9 {strides = array<i32>} : memref<512x128xf32, #tpu.memory_space<vmem>>, vector<512x128xf32>,
    return
  }
  func.func @transform_0(%arg0: i32) -> (i32, i32) {
    %c0_i32 = arith.constant 0 : i32
    %c0_i32_0 = arith.constant 0 : i32
    return %arg0, %c0_i32 : i32, i32
  }
  func.func @transform_1(%arg0: i32) -> (i32, i32) {
    %c0_i32 = arith.constant 0 : i32
    %c0_i32_0 = arith.constant 0 : i32
    return %arg0, %c0_i32 : i32, i32
  }
  func.func @transform_2(%arg0: i32) -> (i32, i32) {
    %c0_i32 = arith.constant 0 : i32
    %c0_i32_0 = arith.constant 0 : i32
    %c0_i32_1 = arith.constant 0 : i32
    return %c0_i32, %c0_i32_0 : i32, i32
  }
  func.func @transform_3(%arg0: i32) -> (i32, i32) {
    %c0_i32 = arith.constant 0 : i32
    %c0_i32_0 = arith.constant 0 : i32
    return %arg0, %c0_i32 : i32, i32
  }
}

</mosaic_0001>

<bundles_post_ra>
// kernel: node_drop.1
= control target key start
LH: loop header
LB: loop body
LE: loop exit
PB: predicated region body
PF: predicated region fallthrough
CT: control target
= control target key end

     0   :  { %v669_v0 = vmov 0   ;;  %s1519_s1 = inlined_call_operand.vmem [shape: f32[512,1], index: 1, kind: input, shape index: {}]   ;;  %s1520_s2 = inlined_call_operand.vmem [shape: f32[1,128], index: 2, kind: input, shape index: {}]   ;;  %s1521_s0 = inlined_call_operand.vmem [shape: f32[512,128], index: 0, kind: input, shape index: {}, may-alias: {0,3}]   ;;  %s1522_s3 = inlined_call_operand.vmem [shape: f32[512,128], index: 3, kind: output, shape index: {}, may-alias: {0,3}]  }
   0x1   :  { %668 = vset.pattern.permute.xlu1 %v669_v0  ;;  %667 = vset.pattern.permute.xlu0 %v669_v0  ;;  %v16_v1 = vld [vmem:[%s1519_s1 + $0x10] sm:$0xff]  ;;  %v14_v2 = vld [vmem:[%s1519_s1] sm:$0xff]  ;;  %v17_v3 = vld [vmem:[%s1519_s1 + $0x18] sm:$0xff] }
   0x2   :  { %vm80_vm0 = vcmp.gt.f32.partialorder %v16_v1, 0.0  ;;  %vm78_vm1 = vcmp.gt.f32.partialorder %v14_v2, 0.0  ;;  %vm81_vm2 = vcmp.gt.f32.partialorder %v17_v3, 0.0  ;;  %v15_v4 = vld [vmem:[%s1519_s1 + $0x8] sm:$0xff]  ;;  %v18_v8 = vld [vmem:[%s1519_s1 + $0x20] sm:$0xff]  ;;  %v21_v11 = vld [vmem:[%s1519_s1 + $0x38] sm:$0xff] }
   0x3   :  { %v209_v5 = vsel %vm80_vm0, 1, %v669_v0  ;;  %v207_v6 = vsel %vm78_vm1, 1, %v669_v0  ;;  %vm79_vm3 = vcmp.gt.f32.partialorder %v15_v4, 0.0  ;;  %v19_v7 = vld [vmem:[%s1519_s1 + $0x28] sm:$0xff]  ;;  %v210_v9 = vsel %vm81_vm2, 1, %v669_v0  ;;  %v20_v12 = vld [vmem:[%s1519_s1 + $0x30] sm:$0xff] }
   0x4   :  { %278 = vperm.xlu1 %668, %v209_v5   ;;  %272 = vperm.xlu0 %667, %v207_v6   ;;  %v208_v10 = vsel %vm79_vm3, 1, %v669_v0  ;;  %vm83_vm4 = vcmp.gt.f32.partialorder %v19_v7, 0.0  ;;  %vm82_vm5 = vcmp.gt.f32.partialorder %v18_v8, 0.0  ;;  %vm85_vm6 = vcmp.gt.f32.partialorder %v21_v11, 0.0  ;;  %v23_v15 = vld [vmem:[%s1519_s1 + $0x48] sm:$0xff]  ;;  %v22_v16 = vld [vmem:[%s1519_s1 + $0x40] sm:$0xff] }
   0x5   :  { %v212_v13 = vsel %vm83_vm4, 1, %v669_v0  ;;  %v211_v14 = vsel %vm82_vm5, 1, %v669_v0  ;;  %vm84_vm7 = vcmp.gt.f32.partialorder %v20_v12, 0.0  ;;  %v25_v17 = vld [vmem:[%s1519_s1 + $0x58] sm:$0xff]  ;;  %v24_v18 = vld [vmem:[%s1519_s1 + $0x50] sm:$0xff]  ;;  %v27_v19 = vld [vmem:[%s1519_s1 + $0x68] sm:$0xff] }
   0x6   :  { %v26_v20 = vld [vmem:[%s1519_s1 + $0x60] sm:$0xff]  ;;  %v29_v21 = vld [vmem:[%s1519_s1 + $0x78] sm:$0xff]  ;;  %v214_v22 = vsel %vm85_vm6, 1, %v669_v0  ;;  %vm87_vm8 = vcmp.gt.f32.partialorder %v23_v15, 0.0  ;;  %v28_v23 = vld [vmem:[%s1519_s1 + $0x70] sm:$0xff]  ;;  %v213_v24 = vsel %vm84_vm7, 1, %v669_v0 }
   0x7   :  { %vm86_vm9 = vcmp.gt.f32.partialorder %v22_v16, 0.0  ;;  %vm89_vm10 = vcmp.gt.f32.partialorder %v25_v17, 0.0  ;;  %vm88_vm11 = vcmp.gt.f32.partialorder %v24_v18, 0.0  ;;  %vm91_vm12 = vcmp.gt.f32.partialorder %v27_v19, 0.0  ;;  %v755_v29 = vld [vmem:[%s1519_s1 + $0x88] sm:$0xff]  ;;  %v46_v31 = vld [vmem:[%s1519_s1 + $0x100] sm:$0xff] }
   0x8   :  { %281 = vperm.xlu1 %668, %v210_v9   ;;  %275 = vperm.xlu0 %667, %v208_v10   ;;  %vm90_vm13 = vcmp.gt.f32.partialorder %v26_v20, 0.0  ;;  %vm93_vm14 = vcmp.gt.f32.partialorder %v29_v21, 0.0  ;;  %v216_v25 = vsel %vm87_vm8, 1, %v669_v0  ;;  %vm92_vm15 = vcmp.gt.f32.partialorder %v28_v23, 0.0  ;;  %v47_v30 = vld [vmem:[%s1519_s1 + $0x108] sm:$0xff]  ;;  %v775_v35 = vld [vmem:[%s1519_s1 + $0x80] sm:$0xff] }
   0x9   :  { %v215_v26 = vsel %vm86_vm9, 1, %v669_v0  ;;  %v218_v27 = vsel %vm89_vm10, 1, %v669_v0  ;;  %v217_v28 = vsel %vm88_vm11, 1, %v669_v0  ;;  %v764_v32 = vsel %vm91_vm12, 1, %v669_v0  ;;  %v49_v36 = vld [vmem:[%s1519_s1 + $0x118] sm:$0xff]  ;;  %v48_v37 = vld [vmem:[%s1519_s1 + $0x110] sm:$0xff] }
   0xa   :  { %v767_v33 = vsel %vm90_vm13, 1, %v669_v0  ;;  %v770_v34 = vsel %vm93_vm14, 1, %v669_v0  ;;  %v784_v38 = vsel %vm92_vm15, 1, %v669_v0  ;;  %vm111_vm0 = vcmp.gt.f32.partialorder %v47_v30, 0.0  ;;  %v51_v39 = vld [vmem:[%s1519_s1 + $0x128] sm:$0xff]  ;;  %v50_v40 = vld [vmem:[%s1519_s1 + $0x120] sm:$0xff] }
   0xb   :  { %vm110_vm1 = vcmp.gt.f32.partialorder %v46_v31, 0.0  ;;  %vm113_vm2 = vcmp.gt.f32.partialorder %v49_v36, 0.0  ;;  %v793_v41 = vsel %vm111_vm0, 1, %v669_v0  ;;  %vm112_vm3 = vcmp.gt.f32.partialorder %v48_v37, 0.0  ;;  %v53_v44 = vld [vmem:[%s1519_s1 + $0x138] sm:$0xff]  ;;  %v52_v45 = vld [vmem:[%s1519_s1 + $0x130] sm:$0xff] }
   0xc   :  { %287 = vperm.xlu1 %668, %v212_v13   ;;  %284 = vperm.xlu0 %667, %v211_v14   ;;  %v796_v42 = vsel %vm110_vm1, 1, %v669_v0  ;;  %v799_v43 = vsel %vm113_vm2, 1, %v669_v0  ;;  %v808_v46 = vsel %vm112_vm3, 1, %v669_v0  ;;  %vm115_vm4 = vcmp.gt.f32.partialorder %v51_v39, 0.0  ;;  %v55_v47 = vld [vmem:[%s1519_s1 + $0x148] sm:$0xff]  ;;  %v54_v48 = vld [vmem:[%s1519_s1 + $0x140] sm:$0xff] }
   0xd   :  { %vm114_vm5 = vcmp.gt.f32.partialorder %v50_v40, 0.0  ;;  %vm117_vm6 = vcmp.gt.f32.partialorder %v53_v44, 0.0  ;;  %vm95_vm7 = vcmp.gt.f32.partialorder %v755_v29, 0.0  ;;  %v818_v49 = vsel %vm115_vm4, 1, %v669_v0  ;;  %v57_v52 = vld [vmem:[%s1519_s1 + $0x158] sm:$0xff]  ;;  %v56_v53 = vld [vmem:[%s1519_s1 + $0x150] sm:$0xff] }
   0xe   :  { %v821_v50 = vsel %vm114_vm5, 1, %v669_v0  ;;  %v824_v51 = vsel %vm117_vm6, 1, %v669_v0  ;;  %vm116_vm8 = vcmp.gt.f32.partialorder %v52_v45, 0.0  ;;  %vm94_vm9 = vcmp.gt.f32.partialorder %v775_v35, 0.0  ;;  %v59_v55 = vld [vmem:[%s1519_s1 + $0x168] sm:$0xff]  ;;  %v58_v56 = vld [vmem:[%s1519_s1 + $0x160] sm:$0xff] }
   0xf   :  { %v834_v54 = vsel %vm116_vm8, 1, %v669_v0  ;;  %vm119_vm10 = vcmp.gt.f32.partialorder %v55_v47, 0.0  ;;  %vm118_vm11 = vcmp.gt.f32.partialorder %v54_v48, 0.0  ;;  %vm121_vm12 = vcmp.gt.f32.partialorder %v57_v52, 0.0  ;;  %v61_v60 = vld [vmem:[%s1519_s1 + $0x178] sm:$0xff]  ;;  %v60_v61 = vld [vmem:[%s1519_s1 + $0x170] sm:$0xff] }
  0x10   :  { %293 = vperm.xlu1 %668, %v214_v22   ;;  %290 = vperm.xlu0 %667, %v213_v24   ;;  %v843_v57 = vsel %vm119_vm10, 1, %v669_v0  ;;  %v846_v58 = vsel %vm118_vm11, 1, %v669_v0  ;;  %v849_v59 = vsel %vm121_vm12, 1, %v669_v0  ;;  %vm120_vm13 = vcmp.gt.f32.partialorder %v56_v53, 0.0  ;;  %v63_v63 = vld [vmem:[%s1519_s1 + $0x188] sm:$0xff]  ;;  %v62_v1 = vld [vmem:[%s1519_s1 + $0x180] sm:$0xff] }
  0x11   :  { %v858_v62 = vsel %vm120_vm13, 1, %v669_v0  ;;  %vm123_vm14 = vcmp.gt.f32.partialorder %v59_v55, 0.0  ;;  %vm122_vm15 = vcmp.gt.f32.partialorder %v58_v56, 0.0  ;;  %vm125_vm0 = vcmp.gt.f32.partialorder %v61_v60, 0.0  ;;  %v65_v5 = vld [vmem:[%s1519_s1 + $0x198] sm:$0xff]  ;;  %v64_v6 = vld [vmem:[%s1519_s1 + $0x190] sm:$0xff] }
  0x12   :  { %v867_v2 = vsel %vm123_vm14, 1, %v669_v0  ;;  %v870_v3 = vsel %vm122_vm15, 1, %v669_v0  ;;  %v873_v4 = vsel %vm125_vm0, 1, %v669_v0  ;;  %vm124_vm1 = vcmp.gt.f32.partialorder %v60_v61, 0.0  ;;  %v67_v8 = vld [vmem:[%s1519_s1 + $0x1a8] sm:$0xff]  ;;  %v66_v9 = vld [vmem:[%s1519_s1 + $0x1a0] sm:$0xff] }
  0x13   :  { %v882_v7 = vsel %vm124_vm1, 1, %v669_v0  ;;  %vm127_vm2 = vcmp.gt.f32.partialorder %v63_v63, 0.0  ;;  %vm126_vm3 = vcmp.gt.f32.partialorder %v62_v1, 0.0  ;;  %vm129_vm4 = vcmp.gt.f32.partialorder %v65_v5, 0.0  ;;  %v69_v13 = vld [vmem:[%s1519_s1 + $0x1b8] sm:$0xff]  ;;  %v68_v14 = vld [vmem:[%s1519_s1 + $0x1b0] sm:$0xff] }
  0x14   :  { %299 = vperm.xlu1 %668, %v216_v25   ;;  %296 = vperm.xlu0 %667, %v215_v26   ;;  %v891_v10 = vsel %vm127_vm2, 1, %v669_v0  ;;  %v894_v11 = vsel %vm126_vm3, 1, %v669_v0  ;;  %v897_v12 = vsel %vm129_vm4, 1, %v669_v0  ;;  %vm128_vm5 = vcmp.gt.f32.partialorder %v64_v6, 0.0  ;;  %v71_v16 = vld [vmem:[%s1519_s1 + $0x1c8] sm:$0xff]  ;;  %v70_v17 = vld [vmem:[%s1519_s1 + $0x1c0] sm:$0xff] }
  0x15   :  { %v908_v15 = vsel %vm128_vm5, 1, %v669_v0  ;;  %vm131_vm6 = vcmp.gt.f32.partialorder %v67_v8, 0.0  ;;  %vm130_vm8 = vcmp.gt.f32.partialorder %v66_v9, 0.0  ;;  %vm133_vm10 = vcmp.gt.f32.partialorder %v69_v13, 0.0  ;;  %v73_v21 = vld [vmem:[%s1519_s1 + $0x1d8] sm:$0xff]  ;;  %v72_v22 = vld [vmem:[%s1519_s1 + $0x1d0] sm:$0xff] }
  0x16   :  { %v917_v18 = vsel %vm131_vm6, 1, %v669_v0  ;;  %v920_v19 = vsel %vm130_vm8, 1, %v669_v0  ;;  %v923_v20 = vsel %vm133_vm10, 1, %v669_v0  ;;  %vm132_vm11 = vcmp.gt.f32.partialorder %v68_v14, 0.0  ;;  %v75_v24 = vld [vmem:[%s1519_s1 + $0x1e8] sm:$0xff]  ;;  %v74_v25 = vld [vmem:[%s1519_s1 + $0x1e0] sm:$0xff] }
  0x17   :  { %v932_v23 = vsel %vm132_vm11, 1, %v669_v0  ;;  %vm135_vm12 = vcmp.gt.f32.partialorder %v71_v16, 0.0  ;;  %vm134_vm13 = vcmp.gt.f32.partialorder %v70_v17, 0.0  ;;  %vm137_vm14 = vcmp.gt.f32.partialorder %v73_v21, 0.0  ;;  %v33_v26 = vld [vmem:[%s1519_s1 + $0x98] sm:$0xff]  ;;  %v76_v29 = vld [vmem:[%s1519_s1 + $0x1f0] sm:$0xff] }
  0x18   :  { %305 = vperm.xlu1 %668, %v218_v27   ;;  %302 = vperm.xlu0 %667, %v217_v28   ;;  %v32_v27 = vld [vmem:[%s1519_s1 + $0x90] sm:$0xff]  ;;  %v947_v28 = vsel %vm135_vm12, 1, %v669_v0  ;;  %v950_v30 = vsel %vm134_vm13, 1, %v669_v0  ;;  %v953_v31 = vsel %vm137_vm14, 1, %v669_v0  ;;  %vm136_vm15 = vcmp.gt.f32.partialorder %v72_v22, 0.0  ;;  %v77_v36 = vld [vmem:[%s1519_s1 + $0x1f8] sm:$0xff] }
  0x19   :  { %vm139_vm0 = vcmp.gt.f32.partialorder %v75_v24, 0.0  ;;  %vm138_vm1 = vcmp.gt.f32.partialorder %v74_v25, 0.0  ;;  %v223_v37 = vsel %vm94_vm9, 1, %v669_v0  ;;  %vm97_vm2 = vcmp.gt.f32.partialorder %v33_v26, 0.0  ;;  %v35_v35 = vld [vmem:[%s1519_s1 + $0xa8] sm:$0xff]  ;;  %v34_v40 = vld [vmem:[%s1519_s1 + $0xa0] sm:$0xff] }
  0x1a   :  { %vm96_vm3 = vcmp.gt.f32.partialorder %v32_v27, 0.0  ;;  %vm140_vm4 = vcmp.gt.f32.partialorder %v76_v29, 0.0  ;;  %v226_v45 = vsel %vm97_vm2, 1, %v669_v0  ;;  %vm99_vm9 = vcmp.gt.f32.partialorder %v35_v35, 0.0  ;;  %v37_v48 = vld [vmem:[%s1519_s1 + $0xb8] sm:$0xff]  ;;  %v36_v52 = vld [vmem:[%s1519_s1 + $0xb0] sm:$0xff] }
  0x1b   :  { %v988_v44 = vsel %vm140_vm4, 1, %v669_v0  ;;  %v225_v47 = vsel %vm96_vm3, 1, %v669_v0  ;;  %vm98_vm5 = vcmp.gt.f32.partialorder %v34_v40, 0.0  ;;  %v228_v53 = vsel %vm99_vm9, 1, %v669_v0  ;;  %v39_v56 = vld [vmem:[%s1519_s1 + $0xc8] sm:$0xff]  ;;  %v38_v60 = vld [vmem:[%s1519_s1 + $0xc0] sm:$0xff] }
  0x1c   :  { %311 = vperm.xlu1 %668, %v764_v32   ;;  %308 = vperm.xlu0 %667, %v767_v33   ;;  %v224_v32 = vsel %vm95_vm7, 1, %v669_v0  ;;  %v961_v33 = vsel %vm136_vm15, 1, %v669_v0  ;;  %vm141_vm7 = vcmp.gt.f32.partialorder %v77_v36, 0.0  ;;  %v227_v55 = vsel %vm98_vm5, 1, %v669_v0  ;;  %v41_v1 = vld [vmem:[%s1519_s1 + $0xd8] sm:$0xff]  ;;  %v40_v5 = vld [vmem:[%s1519_s1 + $0xd0] sm:$0xff] }
  0x1d   :  { %v979_v39 = vsel %vm141_vm7, 1, %v669_v0  ;;  %vm101_vm6 = vcmp.gt.f32.partialorder %v37_v48, 0.0  ;;  %vm100_vm8 = vcmp.gt.f32.partialorder %v36_v52, 0.0  ;;  %vm103_vm10 = vcmp.gt.f32.partialorder %v39_v56, 0.0  ;;  %v43_v9 = vld [vmem:[%s1519_s1 + $0xe8] sm:$0xff]  ;;  %v42_v13 = vld [vmem:[%s1519_s1 + $0xe0] sm:$0xff] }
  0x1e   :  { %v230_v61 = vsel %vm101_vm6, 1, %v669_v0  ;;  %v229_v63 = vsel %vm100_vm8, 1, %v669_v0  ;;  %vm102_vm11 = vcmp.gt.f32.partialorder %v38_v60, 0.0  ;;  %v232_v6 = vsel %vm103_vm10, 1, %v669_v0  ;;  %v45_v17 = vld [vmem:[%s1519_s1 + $0xf8] sm:$0xff]  ;;  %v44_v21 = vld [vmem:[%s1519_s1 + $0xf0] sm:$0xff] }
  0x1f   :  { %v231_v8 = vsel %vm102_vm11, 1, %v669_v0  ;;  %vm105_vm12 = vcmp.gt.f32.partialorder %v41_v1, 0.0  ;;  %vm104_vm13 = vcmp.gt.f32.partialorder %v40_v5, 0.0  ;;  %vm107_vm14 = vcmp.gt.f32.partialorder %v43_v9, 0.0 }
  0x20   :  { %317 = vperm.xlu1 %668, %v770_v34   ;;  %314 = vperm.xlu0 %667, %v784_v38   ;;  %v970_v34 = vsel %vm139_vm0, 1, %v669_v0  ;;  %v973_v38 = vsel %vm138_vm1, 1, %v669_v0  ;;  %v234_v14 = vsel %vm105_vm12, 1, %v669_v0  ;;  %v233_v16 = vsel %vm104_vm13, 1, %v669_v0 }
  0x21   :  { %vm106_vm15 = vcmp.gt.f32.partialorder %v42_v13, 0.0  ;;  %v236_v22 = vsel %vm107_vm14, 1, %v669_v0  ;;  %vm109_vm0 = vcmp.gt.f32.partialorder %v45_v17, 0.0  ;;  %vm108_vm1 = vcmp.gt.f32.partialorder %v44_v21, 0.0 }
  0x22   :  { %v235_v24 = vsel %vm106_vm15, 1, %v669_v0  ;;  %v238_v25 = vsel %vm109_vm0, 1, %v669_v0  ;;  %v237_v26 = vsel %vm108_vm1, 1, %v669_v0  ;;  %v1067_v0 = vld [vmem:[%s1520_s2] ss:$0 sm:$0xff] }
  0x24   :  { %323 = vperm.xlu1 %668, %v224_v32   ;;  %320 = vperm.xlu0 %667, %v223_v37  }
  0x28   :  { %329 = vperm.xlu1 %668, %v226_v45   ;;  %326 = vperm.xlu0 %667, %v225_v47  }
  0x2c   :  { %335 = vperm.xlu1 %668, %v228_v53   ;;  %332 = vperm.xlu0 %667, %v227_v55  }
  0x30   :  { %341 = vperm.xlu1 %668, %v230_v61   ;;  %338 = vperm.xlu0 %667, %v229_v63  }
  0x34   :  { %347 = vperm.xlu1 %668, %v232_v6   ;;  %344 = vperm.xlu0 %667, %v231_v8  }
  0x38   :  { %353 = vperm.xlu1 %668, %v234_v14   ;;  %350 = vperm.xlu0 %667, %v233_v16  }
  0x3c   :  { %359 = vperm.xlu1 %668, %v236_v22   ;;  %356 = vperm.xlu0 %667, %v235_v24  }
  0x40   :  { %365 = vperm.xlu1 %668, %v238_v25   ;;  %362 = vperm.xlu0 %667, %v237_v26  }
  0x44   :  { %371 = vperm.xlu1 %668, %v793_v41   ;;  %368 = vperm.xlu0 %667, %v796_v42   ;;  %v145_v41 = vld [vmem:[%s1521_s0 + $0x10] sm:$0xff]  ;;  %v143_v42 = vld [vmem:[%s1521_s0] sm:$0xff] }
  0x48   :  { %377 = vperm.xlu1 %668, %v799_v43   ;;  %374 = vperm.xlu0 %667, %v808_v46  }
  0x4c   :  { %383 = vperm.xlu1 %668, %v818_v49   ;;  %380 = vperm.xlu0 %667, %v821_v50  }
  0x50   :  { %389 = vperm.xlu1 %668, %v824_v51   ;;  %386 = vperm.xlu0 %667, %v834_v54  }
  0x54   :  { %395 = vperm.xlu1 %668, %v843_v57   ;;  %392 = vperm.xlu0 %667, %v846_v58  }
  0x58   :  { %401 = vperm.xlu1 %668, %v849_v59   ;;  %398 = vperm.xlu0 %667, %v858_v62  }
  0x5c   :  { %407 = vperm.xlu1 %668, %v867_v2   ;;  %404 = vperm.xlu0 %667, %v870_v3  }
  0x60   :  { %413 = vperm.xlu1 %668, %v873_v4   ;;  %410 = vperm.xlu0 %667, %v882_v7  }
  0x64   :  { %419 = vperm.xlu1 %668, %v891_v10   ;;  %416 = vperm.xlu0 %667, %v894_v11  }
  0x68   :  { %425 = vperm.xlu1 %668, %v897_v12   ;;  %422 = vperm.xlu0 %667, %v908_v15  }
  0x6c   :  { %431 = vperm.xlu1 %668, %v917_v18   ;;  %428 = vperm.xlu0 %667, %v920_v19  }
  0x70   :  { %437 = vperm.xlu1 %668, %v923_v20   ;;  %434 = vperm.xlu0 %667, %v932_v23  }
  0x74   :  { %443 = vperm.xlu1 %668, %v947_v28   ;;  %440 = vperm.xlu0 %667, %v950_v30  }
  0x78   :  { %449 = vperm.xlu1 %668, %v953_v31   ;;  %446 = vperm.xlu0 %667, %v961_v33  }
  0x7c   :  { %455 = vperm.xlu1 %668, %v970_v34   ;;  %452 = vperm.xlu0 %667, %v973_v38  }
  0x7f   :  { %v279_v43 = vpop.permute.xlu1 %278  ;;  %v273_v46 = vpop.permute.xlu0 %272 }
  0x80   :  { %vm465_vm7 = vcmp.eq.s32.totalorder %v279_v43, 1  ;;  %vm463_vm2 = vcmp.eq.s32.totalorder %v273_v46, 1  ;;  %461 = vperm.xlu1 %668, %v979_v39   ;;  %458 = vperm.xlu0 %667, %v988_v44  }
  0x81   :  { %v535_v49 = vsel %vm465_vm7, %v1067_v0, %v145_v41  ;;  %v533_v50 = vsel %vm463_vm2, %v1067_v0, %v143_v42 }
  0x82   :  { %599 = vst [vmem:[%s1522_s3 + $0x10] sm:$0xff] %v535_v49  ;;  %597 = vst [vmem:[%s1522_s3] sm:$0xff] %v533_v50 }
  0x83   :  { %v282_v57 = vpop.permute.xlu1 %281  ;;  %v276_v58 = vpop.permute.xlu0 %275 }
  0x84   :  { %vm466_vm3 = vcmp.eq.s32.totalorder %v282_v57, 1  ;;  %vm464_vm4 = vcmp.eq.s32.totalorder %v276_v58, 1 }
  0x87   :  { %v288_v4 = vpop.permute.xlu1 %287  ;;  %v285_v7 = vpop.permute.xlu0 %284 }
  0x88   :  { %vm468_vm9 = vcmp.eq.s32.totalorder %v288_v4, 1  ;;  %vm467_vm5 = vcmp.eq.s32.totalorder %v285_v7, 1 }
  0x89   :  { %v146_v51 = vld [vmem:[%s1521_s0 + $0x18] sm:$0xff]  ;;  %v144_v54 = vld [vmem:[%s1521_s0 + $0x8] sm:$0xff] }
  0x8a   :  { %v536_v59 = vsel %vm466_vm3, %v1067_v0, %v146_v51  ;;  %v534_v62 = vsel %vm464_vm4, %v1067_v0, %v144_v54 }
  0x8b   :  { %600 = vst [vmem:[%s1522_s3 + $0x18] sm:$0xff] %v536_v59  ;;  %598 = vst [vmem:[%s1522_s3 + $0x8] sm:$0xff] %v534_v62  ;;  %v294_v18 = vpop.permute.xlu1 %293  ;;  %v291_v19 = vpop.permute.xlu0 %290 }
  0x8c   :  { %vm470_vm6 = vcmp.eq.s32.totalorder %v294_v18, 1  ;;  %vm469_vm8 = vcmp.eq.s32.totalorder %v291_v19, 1 }
  0x8f   :  { %v300_v30 = vpop.permute.xlu1 %299  ;;  %v297_v31 = vpop.permute.xlu0 %296 }
  0x90   :  { %vm472_vm10 = vcmp.eq.s32.totalorder %v300_v30, 1  ;;  %vm471_vm11 = vcmp.eq.s32.totalorder %v297_v31, 1 }
  0x92   :  { %v148_v2 = vld [vmem:[%s1521_s0 + $0x28] sm:$0xff]  ;;  %v147_v3 = vld [vmem:[%s1521_s0 + $0x20] sm:$0xff] }
  0x93   :  { %v538_v10 = vsel %vm468_vm9, %v1067_v0, %v148_v2  ;;  %v537_v11 = vsel %vm467_vm5, %v1067_v0, %v147_v3  ;;  %v306_v34 = vpop.permute.xlu1 %305  ;;  %v303_v38 = vpop.permute.xlu0 %302 }
  0x94   :  { %602 = vst [vmem:[%s1522_s3 + $0x28] sm:$0xff] %v538_v10  ;;  %601 = vst [vmem:[%s1522_s3 + $0x20] sm:$0xff] %v537_v11  ;;  %vm474_vm12 = vcmp.eq.s32.totalorder %v306_v34, 1  ;;  %vm473_vm13 = vcmp.eq.s32.totalorder %v303_v38, 1 }
  0x97   :  { %v312_v44 = vpop.permute.xlu1 %311  ;;  %v309_v45 = vpop.permute.xlu0 %308 }
  0x98   :  { %vm476_vm14 = vcmp.eq.s32.totalorder %v312_v44, 1  ;;  %vm475_vm15 = vcmp.eq.s32.totalorder %v309_v45, 1 }
  0x9b   :  { %v150_v12 = vld [vmem:[%s1521_s0 + $0x38] sm:$0xff]  ;;  %v149_v15 = vld [vmem:[%s1521_s0 + $0x30] sm:$0xff]  ;;  %v318_v55 = vpop.permute.xlu1 %317  ;;  %v315_v56 = vpop.permute.xlu0 %314 }
  0x9c   :  { %v540_v20 = vsel %vm470_vm6, %v1067_v0, %v150_v12  ;;  %v539_v23 = vsel %vm469_vm8, %v1067_v0, %v149_v15  ;;  %vm478_vm0 = vcmp.eq.s32.totalorder %v318_v55, 1  ;;  %vm477_vm1 = vcmp.eq.s32.totalorder %v315_v56, 1 }
  0x9d   :  { %604 = vst [vmem:[%s1522_s3 + $0x38] sm:$0xff] %v540_v20  ;;  %603 = vst [vmem:[%s1522_s3 + $0x30] sm:$0xff] %v539_v23 }
  0x9f   :  { %v324_v5 = vpop.permute.xlu1 %323  ;;  %v321_v6 = vpop.permute.xlu0 %320 }
  0xa0   :  { %vm480_vm7 = vcmp.eq.s32.totalorder %v324_v5, 1  ;;  %vm479_vm2 = vcmp.eq.s32.totalorder %v321_v6, 1 }
  0xa3   :  { %v330_v16 = vpop.permute.xlu1 %329  ;;  %v327_v17 = vpop.permute.xlu0 %326 }
  0xa4   :  { %v152_v27 = vld [vmem:[%s1521_s0 + $0x48] sm:$0xff]  ;;  %v151_v28 = vld [vmem:[%s1521_s0 + $0x40] sm:$0xff]  ;;  %vm482_vm3 = vcmp.eq.s32.totalorder %v330_v16, 1  ;;  %vm481_vm4 = vcmp.eq.s32.totalorder %v327_v17, 1 }
  0xa5   :  { %v542_v32 = vsel %vm472_vm10, %v1067_v0, %v152_v27  ;;  %v541_v33 = vsel %vm471_vm11, %v1067_v0, %v151_v28 }
  0xa6   :  { %606 = vst [vmem:[%s1522_s3 + $0x48] sm:$0xff] %v542_v32  ;;  %605 = vst [vmem:[%s1522_s3 + $0x40] sm:$0xff] %v541_v33 }
  0xa7   :  { %v336_v26 = vpop.permute.xlu1 %335  ;;  %v333_v41 = vpop.permute.xlu0 %332 }
  0xa8   :  { %vm484_vm9 = vcmp.eq.s32.totalorder %v336_v26, 1  ;;  %vm483_vm5 = vcmp.eq.s32.totalorder %v333_v41, 1 }
  0xab   :  { %v342_v50 = vpop.permute.xlu1 %341  ;;  %v339_v51 = vpop.permute.xlu0 %338 }
  0xac   :  { %vm486_vm6 = vcmp.eq.s32.totalorder %v342_v50, 1  ;;  %vm485_vm8 = vcmp.eq.s32.totalorder %v339_v51, 1 }
  0xad   :  { %v154_v36 = vld [vmem:[%s1521_s0 + $0x58] sm:$0xff]  ;;  %v153_v37 = vld [vmem:[%s1521_s0 + $0x50] sm:$0xff] }
  0xae   :  { %v544_v29 = vsel %vm474_vm12, %v1067_v0, %v154_v36  ;;  %v543_v39 = vsel %vm473_vm13, %v1067_v0, %v153_v37 }
  0xaf   :  { %608 = vst [vmem:[%s1522_s3 + $0x58] sm:$0xff] %v544_v29  ;;  %607 = vst [vmem:[%s1522_s3 + $0x50] sm:$0xff] %v543_v39  ;;  %v348_v62 = vpop.permute.xlu1 %347  ;;  %v345_v2 = vpop.permute.xlu0 %344 }
  0xb0   :  { %vm488_vm10 = vcmp.eq.s32.totalorder %v348_v62, 1  ;;  %vm487_vm11 = vcmp.eq.s32.totalorder %v345_v2, 1 }
  0xb3   :  { %v354_v11 = vpop.permute.xlu1 %353  ;;  %v351_v12 = vpop.permute.xlu0 %350 }
  0xb4   :  { %vm490_vm12 = vcmp.eq.s32.totalorder %v354_v11, 1  ;;  %vm489_vm13 = vcmp.eq.s32.totalorder %v351_v12, 1 }
  0xb6   :  { %v156_v35 = vld [vmem:[%s1521_s0 + $0x68] sm:$0xff]  ;;  %v155_v40 = vld [vmem:[%s1521_s0 + $0x60] sm:$0xff] }
  0xb7   :  { %v546_v47 = vsel %vm476_vm14, %v1067_v0, %v156_v35  ;;  %v545_v48 = vsel %vm475_vm15, %v1067_v0, %v155_v40  ;;  %v360_v23 = vpop.permute.xlu1 %359  ;;  %v357_v27 = vpop.permute.xlu0 %356 }
  0xb8   :  { %610 = vst [vmem:[%s1522_s3 + $0x68] sm:$0xff] %v546_v47  ;;  %609 = vst [vmem:[%s1522_s3 + $0x60] sm:$0xff] %v545_v48  ;;  %vm492_vm14 = vcmp.eq.s32.totalorder %v360_v23, 1  ;;  %vm491_vm15 = vcmp.eq.s32.totalorder %v357_v27, 1 }
  0xbb   :  { %v366_v33 = vpop.permute.xlu1 %365  ;;  %v363_v36 = vpop.permute.xlu0 %362 }
  0xbf   :  { %v158_v52 = vld [vmem:[%s1521_s0 + $0x78] sm:$0xff]  ;;  %v157_v53 = vld [vmem:[%s1521_s0 + $0x70] sm:$0xff]  ;;  %v372_v39 = vpop.permute.xlu1 %371  ;;  %v369_v35 = vpop.permute.xlu0 %368 }
  0xc0   :  { %v548_v60 = vsel %vm478_vm0, %v1067_v0, %v158_v52  ;;  %v547_v61 = vsel %vm477_vm1, %v1067_v0, %v157_v53  ;;  %vm494_vm0 = vcmp.eq.s32.totalorder %v366_v33, 1  ;;  %vm493_vm1 = vcmp.eq.s32.totalorder %v363_v36, 1 }
  0xc1   :  { %612 = vst [vmem:[%s1522_s3 + $0x78] sm:$0xff] %v548_v60  ;;  %611 = vst [vmem:[%s1522_s3 + $0x70] sm:$0xff] %v547_v61 }
  0xc3   :  { %v378_v48 = vpop.permute.xlu1 %377  ;;  %v375_v52 = vpop.permute.xlu0 %374 }
  0xc7   :  { %v384_v61 = vpop.permute.xlu1 %383 }
  0xc8   :  { %v160_v63 = vld [vmem:[%s1521_s0 + $0x88] sm:$0xff]  ;;  %v159_v1 = vld [vmem:[%s1521_s0 + $0x80] sm:$0xff] }
  0xc9   :  { %v550_v8 = vsel %vm480_vm7, %v1067_v0, %v160_v63  ;;  %v549_v9 = vsel %vm479_vm2, %v1067_v0, %v159_v1  ;;  %vm496_vm7 = vcmp.eq.s32.totalorder %v372_v39, 1  ;;  %vm495_vm2 = vcmp.eq.s32.totalorder %v369_v35, 1  ;;  %v381_v63 = vpop.permute.xlu0 %380 }
  0xca   :  { %614 = vst [vmem:[%s1522_s3 + $0x88] sm:$0xff] %v550_v8  ;;  %613 = vst [vmem:[%s1522_s3 + $0x80] sm:$0xff] %v549_v9 }
  0xcb   :  { %v390_v9 = vpop.permute.xlu1 %389 }
  0xd1   :  { %v162_v13 = vld [vmem:[%s1521_s0 + $0x98] sm:$0xff]  ;;  %v161_v14 = vld [vmem:[%s1521_s0 + $0x90] sm:$0xff] }
  0xd2   :  { %v552_v21 = vsel %vm482_vm3, %v1067_v0, %v162_v13  ;;  %v551_v22 = vsel %vm481_vm4, %v1067_v0, %v161_v14  ;;  %vm498_vm3 = vcmp.eq.s32.totalorder %v378_v48, 1  ;;  %vm497_vm4 = vcmp.eq.s32.totalorder %v375_v52, 1  ;;  %v387_v13 = vpop.permute.xlu0 %386 }
  0xd3   :  { %616 = vst [vmem:[%s1522_s3 + $0x98] sm:$0xff] %v552_v21  ;;  %615 = vst [vmem:[%s1522_s3 + $0x90] sm:$0xff] %v551_v22  ;;  %v396_v22 = vpop.permute.xlu1 %395 }
  0xda   :  { %v164_v24 = vld [vmem:[%s1521_s0 + $0xa8] sm:$0xff]  ;;  %v163_v25 = vld [vmem:[%s1521_s0 + $0xa0] sm:$0xff] }
  0xdb   :  { %v554_v42 = vsel %vm484_vm9, %v1067_v0, %v164_v24  ;;  %v553_v43 = vsel %vm483_vm5, %v1067_v0, %v163_v25  ;;  %vm500_vm9 = vcmp.eq.s32.totalorder %v384_v61, 1  ;;  %vm499_vm5 = vcmp.eq.s32.totalorder %v381_v63, 1  ;;  %v393_v24 = vpop.permute.xlu0 %392 }
  0xdc   :  { %618 = vst [vmem:[%s1522_s3 + $0xa8] sm:$0xff] %v554_v42  ;;  %617 = vst [vmem:[%s1522_s3 + $0xa0] sm:$0xff] %v553_v43  ;;  %v402_v43 = vpop.permute.xlu1 %401 }
  0xe3   :  { %v166_v46 = vld [vmem:[%s1521_s0 + $0xb8] sm:$0xff]  ;;  %v165_v49 = vld [vmem:[%s1521_s0 + $0xb0] sm:$0xff] }
  0xe4   :  { %v556_v54 = vsel %vm486_vm6, %v1067_v0, %v166_v46  ;;  %v555_v57 = vsel %vm485_vm8, %v1067_v0, %v165_v49  ;;  %vm502_vm6 = vcmp.eq.s32.totalorder %v390_v9, 1  ;;  %vm501_vm8 = vcmp.eq.s32.totalorder %v387_v13, 1  ;;  %v399_v46 = vpop.permute.xlu0 %398 }
  0xe5   :  { %620 = vst [vmem:[%s1522_s3 + $0xb8] sm:$0xff] %v556_v54  ;;  %619 = vst [vmem:[%s1522_s3 + $0xb0] sm:$0xff] %v555_v57  ;;  %v408_v57 = vpop.permute.xlu1 %407 }
  0xec   :  { %v168_v58 = vld [vmem:[%s1521_s0 + $0xc8] sm:$0xff]  ;;  %v167_v59 = vld [vmem:[%s1521_s0 + $0xc0] sm:$0xff] }
  0xed   :  { %v558_v3 = vsel %vm488_vm10, %v1067_v0, %v168_v58  ;;  %v557_v4 = vsel %vm487_vm11, %v1067_v0, %v167_v59  ;;  %vm504_vm10 = vcmp.eq.s32.totalorder %v396_v22, 1  ;;  %vm503_vm11 = vcmp.eq.s32.totalorder %v393_v24, 1  ;;  %v405_v58 = vpop.permute.xlu0 %404 }
  0xee   :  { %622 = vst [vmem:[%s1522_s3 + $0xc8] sm:$0xff] %v558_v3  ;;  %621 = vst [vmem:[%s1522_s3 + $0xc0] sm:$0xff] %v557_v4  ;;  %v414_v4 = vpop.permute.xlu1 %413 }
  0xf5   :  { %v170_v7 = vld [vmem:[%s1521_s0 + $0xd8] sm:$0xff]  ;;  %v169_v10 = vld [vmem:[%s1521_s0 + $0xd0] sm:$0xff] }
  0xf6   :  { %v560_v15 = vsel %vm490_vm12, %v1067_v0, %v170_v7  ;;  %v559_v18 = vsel %vm489_vm13, %v1067_v0, %v169_v10  ;;  %vm506_vm12 = vcmp.eq.s32.totalorder %v402_v43, 1  ;;  %vm505_vm13 = vcmp.eq.s32.totalorder %v399_v46, 1  ;;  %v411_v7 = vpop.permute.xlu0 %410 }
  0xf7   :  { %624 = vst [vmem:[%s1522_s3 + $0xd8] sm:$0xff] %v560_v15  ;;  %623 = vst [vmem:[%s1522_s3 + $0xd0] sm:$0xff] %v559_v18  ;;  %v420_v18 = vpop.permute.xlu1 %419 }
  0xfe   :  { %v172_v19 = vld [vmem:[%s1521_s0 + $0xe8] sm:$0xff]  ;;  %v171_v20 = vld [vmem:[%s1521_s0 + $0xe0] sm:$0xff] }
  0xff   :  { %v562_v28 = vsel %vm492_vm14, %v1067_v0, %v172_v19  ;;  %v561_v30 = vsel %vm491_vm15, %v1067_v0, %v171_v20  ;;  %vm508_vm14 = vcmp.eq.s32.totalorder %v408_v57, 1  ;;  %vm507_vm15 = vcmp.eq.s32.totalorder %v405_v58, 1  ;;  %v417_v19 = vpop.permute.xlu0 %416 }
 0x100   :  { %626 = vst [vmem:[%s1522_s3 + $0xe8] sm:$0xff] %v562_v28  ;;  %625 = vst [vmem:[%s1522_s3 + $0xe0] sm:$0xff] %v561_v30  ;;  %v426_v30 = vpop.permute.xlu1 %425 }
 0x107   :  { %v174_v31 = vld [vmem:[%s1521_s0 + $0xf8] sm:$0xff]  ;;  %v173_v32 = vld [vmem:[%s1521_s0 + $0xf0] sm:$0xff] }
 0x108   :  { %v564_v37 = vsel %vm494_vm0, %v1067_v0, %v174_v31  ;;  %v563_v34 = vsel %vm493_vm1, %v1067_v0, %v173_v32  ;;  %vm510_vm0 = vcmp.eq.s32.totalorder %v414_v4, 1  ;;  %vm509_vm1 = vcmp.eq.s32.totalorder %v411_v7, 1  ;;  %v423_v31 = vpop.permute.xlu0 %422 }
 0x109   :  { %628 = vst [vmem:[%s1522_s3 + $0xf8] sm:$0xff] %v564_v37  ;;  %627 = vst [vmem:[%s1522_s3 + $0xf0] sm:$0xff] %v563_v34  ;;  %v432_v34 = vpop.permute.xlu1 %431 }
 0x110   :  { %v176_v38 = vld [vmem:[%s1521_s0 + $0x108] sm:$0xff]  ;;  %v175_v29 = vld [vmem:[%s1521_s0 + $0x100] sm:$0xff] }
 0x111   :  { %v566_v40 = vsel %vm496_vm7, %v1067_v0, %v176_v38  ;;  %v565_v44 = vsel %vm495_vm2, %v1067_v0, %v175_v29  ;;  %vm512_vm7 = vcmp.eq.s32.totalorder %v420_v18, 1  ;;  %vm511_vm2 = vcmp.eq.s32.totalorder %v417_v19, 1  ;;  %v429_v38 = vpop.permute.xlu0 %428 }
 0x112   :  { %630 = vst [vmem:[%s1522_s3 + $0x108] sm:$0xff] %v566_v40  ;;  %629 = vst [vmem:[%s1522_s3 + $0x100] sm:$0xff] %v565_v44  ;;  %v438_v44 = vpop.permute.xlu1 %437 }
 0x119   :  { %v178_v45 = vld [vmem:[%s1521_s0 + $0x118] sm:$0xff]  ;;  %v177_v47 = vld [vmem:[%s1521_s0 + $0x110] sm:$0xff] }
 0x11a   :  { %v568_v53 = vsel %vm498_vm3, %v1067_v0, %v178_v45  ;;  %v567_v55 = vsel %vm497_vm4, %v1067_v0, %v177_v47  ;;  %vm514_vm3 = vcmp.eq.s32.totalorder %v426_v30, 1  ;;  %vm513_vm4 = vcmp.eq.s32.totalorder %v423_v31, 1  ;;  %v435_v45 = vpop.permute.xlu0 %434 }
 0x11b   :  { %632 = vst [vmem:[%s1522_s3 + $0x118] sm:$0xff] %v568_v53  ;;  %631 = vst [vmem:[%s1522_s3 + $0x110] sm:$0xff] %v567_v55  ;;  %v444_v55 = vpop.permute.xlu1 %443 }
 0x122   :  { %v180_v56 = vld [vmem:[%s1521_s0 + $0x128] sm:$0xff]  ;;  %v179_v60 = vld [vmem:[%s1521_s0 + $0x120] sm:$0xff] }
 0x123   :  { %v570_v1 = vsel %vm500_vm9, %v1067_v0, %v180_v56  ;;  %v569_v5 = vsel %vm499_vm5, %v1067_v0, %v179_v60  ;;  %vm516_vm9 = vcmp.eq.s32.totalorder %v432_v34, 1  ;;  %vm515_vm5 = vcmp.eq.s32.totalorder %v429_v38, 1  ;;  %v441_v56 = vpop.permute.xlu0 %440 }
 0x124   :  { %634 = vst [vmem:[%s1522_s3 + $0x128] sm:$0xff] %v570_v1  ;;  %633 = vst [vmem:[%s1522_s3 + $0x120] sm:$0xff] %v569_v5  ;;  %v450_v5 = vpop.permute.xlu1 %449 }
 0x12b   :  { %v182_v6 = vld [vmem:[%s1521_s0 + $0x138] sm:$0xff]  ;;  %v181_v8 = vld [vmem:[%s1521_s0 + $0x130] sm:$0xff] }
 0x12c   :  { %v572_v14 = vsel %vm502_vm6, %v1067_v0, %v182_v6  ;;  %v571_v16 = vsel %vm501_vm8, %v1067_v0, %v181_v8  ;;  %vm518_vm6 = vcmp.eq.s32.totalorder %v438_v44, 1  ;;  %vm517_vm8 = vcmp.eq.s32.totalorder %v435_v45, 1  ;;  %v447_v6 = vpop.permute.xlu0 %446 }
 0x12d   :  { %636 = vst [vmem:[%s1522_s3 + $0x138] sm:$0xff] %v572_v14  ;;  %635 = vst [vmem:[%s1522_s3 + $0x130] sm:$0xff] %v571_v16  ;;  %v456_v16 = vpop.permute.xlu1 %455 }
 0x134   :  { %v184_v17 = vld [vmem:[%s1521_s0 + $0x148] sm:$0xff]  ;;  %v183_v21 = vld [vmem:[%s1521_s0 + $0x140] sm:$0xff] }
 0x135   :  { %v574_v25 = vsel %vm504_vm10, %v1067_v0, %v184_v17  ;;  %v573_v26 = vsel %vm503_vm11, %v1067_v0, %v183_v21  ;;  %vm520_vm10 = vcmp.eq.s32.totalorder %v444_v55, 1  ;;  %vm519_vm11 = vcmp.eq.s32.totalorder %v441_v56, 1  ;;  %v453_v17 = vpop.permute.xlu0 %452 }
 0x136   :  { %638 = vst [vmem:[%s1522_s3 + $0x148] sm:$0xff] %v574_v25  ;;  %637 = vst [vmem:[%s1522_s3 + $0x140] sm:$0xff] %v573_v26  ;;  %v462_v26 = vpop.permute.xlu1 %461 }
 0x13d   :  { %v186_v41 = vld [vmem:[%s1521_s0 + $0x158] sm:$0xff]  ;;  %v185_v42 = vld [vmem:[%s1521_s0 + $0x150] sm:$0xff] }
 0x13e   :  { %v576_v49 = vsel %vm506_vm12, %v1067_v0, %v186_v41  ;;  %v575_v50 = vsel %vm505_vm13, %v1067_v0, %v185_v42  ;;  %vm522_vm12 = vcmp.eq.s32.totalorder %v450_v5, 1  ;;  %vm521_vm13 = vcmp.eq.s32.totalorder %v447_v6, 1  ;;  %v459_v41 = vpop.permute.xlu0 %458 }
 0x13f   :  { %640 = vst [vmem:[%s1522_s3 + $0x158] sm:$0xff] %v576_v49  ;;  %639 = vst [vmem:[%s1522_s3 + $0x150] sm:$0xff] %v575_v50 }
 0x146   :  { %v188_v51 = vld [vmem:[%s1521_s0 + $0x168] sm:$0xff]  ;;  %v187_v54 = vld [vmem:[%s1521_s0 + $0x160] sm:$0xff] }
 0x147   :  { %v578_v59 = vsel %vm508_vm14, %v1067_v0, %v188_v51  ;;  %v577_v62 = vsel %vm507_vm15, %v1067_v0, %v187_v54  ;;  %vm524_vm14 = vcmp.eq.s32.totalorder %v456_v16, 1  ;;  %vm523_vm15 = vcmp.eq.s32.totalorder %v453_v17, 1 }
 0x148   :  { %642 = vst [vmem:[%s1522_s3 + $0x168] sm:$0xff] %v578_v59  ;;  %641 = vst [vmem:[%s1522_s3 + $0x160] sm:$0xff] %v577_v62 }
 0x14f   :  { %v190_v2 = vld [vmem:[%s1521_s0 + $0x178] sm:$0xff]  ;;  %v189_v3 = vld [vmem:[%s1521_s0 + $0x170] sm:$0xff] }
 0x150   :  { %v580_v10 = vsel %vm510_vm0, %v1067_v0, %v190_v2  ;;  %v579_v11 = vsel %vm509_vm1, %v1067_v0, %v189_v3  ;;  %vm526_vm0 = vcmp.eq.s32.totalorder %v462_v26, 1  ;;  %vm525_vm1 = vcmp.eq.s32.totalorder %v459_v41, 1 }
 0x151   :  { %644 = vst [vmem:[%s1522_s3 + $0x178] sm:$0xff] %v580_v10  ;;  %643 = vst [vmem:[%s1522_s3 + $0x170] sm:$0xff] %v579_v11 }
 0x158   :  { %v192_v12 = vld [vmem:[%s1521_s0 + $0x188] sm:$0xff]  ;;  %v191_v15 = vld [vmem:[%s1521_s0 + $0x180] sm:$0xff] }
 0x159   :  { %v582_v20 = vsel %vm512_vm7, %v1067_v0, %v192_v12  ;;  %v581_v23 = vsel %vm511_vm2, %v1067_v0, %v191_v15 }
 0x15a   :  { %646 = vst [vmem:[%s1522_s3 + $0x188] sm:$0xff] %v582_v20  ;;  %645 = vst [vmem:[%s1522_s3 + $0x180] sm:$0xff] %v581_v23 }
 0x161   :  { %v194_v27 = vld [vmem:[%s1521_s0 + $0x198] sm:$0xff]  ;;  %v193_v28 = vld [vmem:[%s1521_s0 + $0x190] sm:$0xff] }
 0x162   :  { %v584_v32 = vsel %vm514_vm3, %v1067_v0, %v194_v27  ;;  %v583_v33 = vsel %vm513_vm4, %v1067_v0, %v193_v28 }
 0x163   :  { %648 = vst [vmem:[%s1522_s3 + $0x198] sm:$0xff] %v584_v32  ;;  %647 = vst [vmem:[%s1522_s3 + $0x190] sm:$0xff] %v583_v33 }
 0x16a   :  { %v196_v36 = vld [vmem:[%s1521_s0 + $0x1a8] sm:$0xff]  ;;  %v195_v37 = vld [vmem:[%s1521_s0 + $0x1a0] sm:$0xff] }
 0x16b   :  { %v586_v29 = vsel %vm516_vm9, %v1067_v0, %v196_v36  ;;  %v585_v39 = vsel %vm515_vm5, %v1067_v0, %v195_v37 }
 0x16c   :  { %650 = vst [vmem:[%s1522_s3 + $0x1a8] sm:$0xff] %v586_v29  ;;  %649 = vst [vmem:[%s1522_s3 + $0x1a0] sm:$0xff] %v585_v39 }
 0x173   :  { %v198_v35 = vld [vmem:[%s1521_s0 + $0x1b8] sm:$0xff]  ;;  %v197_v40 = vld [vmem:[%s1521_s0 + $0x1b0] sm:$0xff] }
 0x174   :  { %v588_v47 = vsel %vm518_vm6, %v1067_v0, %v198_v35  ;;  %v587_v48 = vsel %vm517_vm8, %v1067_v0, %v197_v40 }
 0x175   :  { %652 = vst [vmem:[%s1522_s3 + $0x1b8] sm:$0xff] %v588_v47  ;;  %651 = vst [vmem:[%s1522_s3 + $0x1b0] sm:$0xff] %v587_v48 }
 0x17c   :  { %v200_v52 = vld [vmem:[%s1521_s0 + $0x1c8] sm:$0xff]  ;;  %v199_v53 = vld [vmem:[%s1521_s0 + $0x1c0] sm:$0xff] }
 0x17d   :  { %v590_v60 = vsel %vm520_vm10, %v1067_v0, %v200_v52  ;;  %v589_v61 = vsel %vm519_vm11, %v1067_v0, %v199_v53 }
 0x17e   :  { %654 = vst [vmem:[%s1522_s3 + $0x1c8] sm:$0xff] %v590_v60  ;;  %653 = vst [vmem:[%s1522_s3 + $0x1c0] sm:$0xff] %v589_v61 }
 0x185   :  { %v202_v63 = vld [vmem:[%s1521_s0 + $0x1d8] sm:$0xff]  ;;  %v201_v1 = vld [vmem:[%s1521_s0 + $0x1d0] sm:$0xff] }
 0x186   :  { %v592_v8 = vsel %vm522_vm12, %v1067_v0, %v202_v63  ;;  %v591_v9 = vsel %vm521_vm13, %v1067_v0, %v201_v1 }
 0x187   :  { %656 = vst [vmem:[%s1522_s3 + $0x1d8] sm:$0xff] %v592_v8  ;;  %655 = vst [vmem:[%s1522_s3 + $0x1d0] sm:$0xff] %v591_v9 }
 0x18e   :  { %v204_v13 = vld [vmem:[%s1521_s0 + $0x1e8] sm:$0xff]  ;;  %v203_v14 = vld [vmem:[%s1521_s0 + $0x1e0] sm:$0xff] }
 0x18f   :  { %v594_v21 = vsel %vm524_vm14, %v1067_v0, %v204_v13  ;;  %v593_v22 = vsel %vm523_vm15, %v1067_v0, %v203_v14 }
 0x190   :  { %658 = vst [vmem:[%s1522_s3 + $0x1e8] sm:$0xff] %v594_v21  ;;  %657 = vst [vmem:[%s1522_s3 + $0x1e0] sm:$0xff] %v593_v22 }
 0x197   :  { %v206_v24 = vld [vmem:[%s1521_s0 + $0x1f8] sm:$0xff]  ;;  %v205_v25 = vld [vmem:[%s1521_s0 + $0x1f0] sm:$0xff] }
 0x198   :  { %v596_v42 = vsel %vm526_vm0, %v1067_v0, %v206_v24  ;;  %v595_v43 = vsel %vm525_vm1, %v1067_v0, %v205_v25 }
 0x199   :  { %660 = vst [vmem:[%s1522_s3 + $0x1f8] sm:$0xff] %v596_v42  ;;  %659 = vst [vmem:[%s1522_s3 + $0x1f0] sm:$0xff] %v595_v43 }

</bundles_post_ra>
